<compile_context>
chip_gen: v6e
topology: v6e:2x2x1
jax: 0.10.0
libtpu: 0.0.40
codegen_flags: <defaults>
</compile_context>

<pallas_src>
import jax
import jax.numpy as jnp
from jax.experimental import pallas as pl
from jax.experimental.pallas import tpu as pltpu


# Tile working-set budget (double-buffered) and the scoped-VMEM limit we request.
# Sized for the smallest generation (v7x: 64 MiB physical per TensorCore);
# v5e / v6e have 128 MiB so this is conservative there.
_TILE_VMEM_BUDGET_BYTES = 36 * 1024 * 1024
_VMEM_LIMIT_BYTES = 48 * 1024 * 1024


def _sigmoid(x):
    # Numerically-stable sigmoid: exp always sees a non-positive argument (runs on
    # the EUP slot, hidden next to the MXU); one approx EUP reciprocal + one VPU
    # multiply replaces two full-precision divides.
    z = jnp.exp(-jnp.abs(x))
    r = pl.reciprocal(1.0 + z, approx=True)
    return jnp.where(x >= 0, r, z * r)


def _rbm_kernel_acc_in_out(v_ref, w_ref, b_ref, o_ref):
    # f32 output: accumulate directly into the resident output block (output block
    # index is constant across k), saving a tm*tn*4 B scratch and a final copy.
    @pl.when(pl.program_id(2) == 0)
    def _():
        o_ref[...] = jnp.zeros_like(o_ref)

    o_ref[...] += jnp.dot(v_ref[...], w_ref[...], preferred_element_type=jnp.float32)

    @pl.when(pl.program_id(2) == pl.num_programs(2) - 1)
    def _():
        o_ref[...] = _sigmoid(o_ref[...] + b_ref[...].astype(jnp.float32))


def _rbm_kernel_scratch_acc(v_ref, w_ref, b_ref, o_ref, acc_ref):
    # Non-f32 output: accumulate in an f32 VMEM scratch, cast once at the end.
    @pl.when(pl.program_id(2) == 0)
    def _():
        acc_ref[...] = jnp.zeros_like(acc_ref)

    acc_ref[...] += jnp.dot(v_ref[...], w_ref[...], preferred_element_type=jnp.float32)

    @pl.when(pl.program_id(2) == pl.num_programs(2) - 1)
    def _():
        logits = acc_ref[...] + b_ref[...].astype(jnp.float32)
        o_ref[...] = _sigmoid(logits).astype(o_ref.dtype)


def _largest_divisor_tile(dim, candidates):
    for c in candidates:
        if c <= dim and dim % c == 0:
            return c
    return dim  # full-extent block is always legal (no (8,128) constraint then)


def _select_tiles(M, K, N, in_itemsize, out_itemsize, acc_in_out):
    """Pick (tm, tn, tk).

    Priorities: stream W exactly once (full-M tile so the i-grid collapses),
    lane-dense output tiles, few 'arbitrary' K steps, and >= 2 parallel grid
    steps so both v7x TensorCores get work.  Footprint sized for 64 MiB VMEM.
    """
    tn = _largest_divisor_tile(N, (512, 256, 128))
    tk = _largest_divisor_tile(K, (1024, 512, 256, 128))

    def footprint(tm_, tn_, tk_):
        in_b = 2 * (tm_ * tk_ + tk_ * tn_) * in_itemsize + 2 * tn_ * 4  # dbl-buffered
        out_b = 2 * tm_ * tn_ * out_itemsize
        acc_b = 0 if acc_in_out else tm_ * tn_ * 4
        return in_b + out_b + acc_b

    tm = None
    # Full-M tile -> W (the dominant HBM stream) is read from HBM exactly once.
    if M <= 4096 and footprint(M, tn, tk) <= _TILE_VMEM_BUDGET_BYTES:
        tm = M
    else:
        # Avoid tiny tm (8/16/32 rows waste the 256-tall MXU) unless forced.
        for c in (512, 256, 128, 64, 32, 16, 8):
            if c <= M and M % c == 0 and footprint(c, tn, tk) <= _TILE_VMEM_BUDGET_BYTES:
                tm = c
                break
    if tm is None:
        tm = _largest_divisor_tile(M, (256, 128, 64, 32, 16, 8))
        while (footprint(tm, tn, tk) > _TILE_VMEM_BUDGET_BYTES
               and tk >= 256 and (tk // 2) % 128 == 0):
            tk //= 2

    # v7x shards parallel grid axes across its 2 TensorCores: guarantee at least
    # two parallel steps when possible (neutral on v5e/v6e).  Halving tn keeps W
    # streamed once; only the (small) v operand is re-streamed.
    if (M // tm) * (N // tn) == 1:
        if tn % 256 == 0:
            tn //= 2
        elif tm % 16 == 0:
            tm //= 2
    return tm, tn, tk


def rbm_forward(v, W, hidden_bias, *, compute_dtype=None):
    """h_prob = sigmoid(v @ W + hidden_bias) computed in a Pallas TPU kernel.

    For f32 inputs the v/W operand streams default to bf16 (this kernel is
    memory-bound and the MXU is bf16-native on all generations) while MXU
    accumulation, bias add, sigmoid and the output stay f32.  Pass
    compute_dtype=jnp.float32 to force full-f32 operand streams.
    """
    M, K = v.shape
    K2, N = W.shape
    assert K == K2, (v.shape, W.shape)
    out_dtype = v.dtype

    if compute_dtype is None and v.dtype == jnp.float32:
        compute_dtype = jnp.bfloat16
    if compute_dtype is not None:
        v = v.astype(compute_dtype)
        W = W.astype(compute_dtype)
    b2d = hidden_bias.reshape(1, N).astype(jnp.float32)

    out_itemsize = jnp.dtype(out_dtype).itemsize
    acc_in_out = jnp.dtype(out_dtype) == jnp.dtype(jnp.float32)
    tm, tn, tk = _select_tiles(M, K, N, v.dtype.itemsize, out_itemsize, acc_in_out)
    gi, gj, gk = pl.cdiv(M, tm), pl.cdiv(N, tn), pl.cdiv(K, tk)

    if acc_in_out:
        kernel = _rbm_kernel_acc_in_out
        scratch_shapes = []
    else:
        kernel = _rbm_kernel_scratch_acc
        scratch_shapes = [pltpu.VMEM((tm, tn), jnp.float32)]

    # With i outermost: v is re-streamed once per N tile, W once per M tile.
    bytes_accessed = (
        gj * v.size * v.dtype.itemsize
        + gi * W.size * W.dtype.itemsize
        + gi * b2d.size * b2d.dtype.itemsize
        + M * N * out_itemsize
    )

    return pl.pallas_call(
        kernel,
        out_shape=jax.ShapeDtypeStruct((M, N), out_dtype),
        grid_spec=pltpu.PrefetchScalarGridSpec(
            num_scalar_prefetch=0,
            grid=(gi, gj, gk),
            in_specs=[
                pl.BlockSpec((tm, tk), lambda i, j, k: (i, k)),   # v tile
                pl.BlockSpec((tk, tn), lambda i, j, k: (k, j)),   # W tile
                pl.BlockSpec((1, tn), lambda i, j, k: (0, j)),    # bias tile
            ],
            out_specs=pl.BlockSpec((tm, tn), lambda i, j, k: (i, j)),
            scratch_shapes=scratch_shapes,
        ),
        compiler_params=pltpu.CompilerParams(
            dimension_semantics=("parallel", "parallel", "arbitrary"),
            vmem_limit_bytes=_VMEM_LIMIT_BYTES,
        ),
        cost_estimate=pl.CostEstimate(
            flops=2 * M * N * K,
            transcendentals=M * N,
            bytes_accessed=bytes_accessed,
        ),
    )(v, W, b2d)


if __name__ == "__main__":
    key = jax.random.PRNGKey(0)
    k_w, k_v, k_w2, k_v2 = jax.random.split(key, 4)

    # --- Small RBM (n_visible=256, n_hidden=128, batch=8) ---
    n_visible, n_hidden, batch = 256, 128, 8
    # Deterministic init matching torch: W ~ 0.1 * N(0,1), biases = 0.
    W = 0.1 * jax.random.normal(k_w, (n_visible, n_hidden), dtype=jnp.float32)
    hidden_bias = jnp.zeros((n_hidden,), dtype=jnp.float32)
    # visible_bias / k are unused by forward().
    # TODO(synk): bernoulli sampling in sample_hidden is discarded by forward(), so not implemented.
    v = jax.random.uniform(k_v, (batch, n_visible), dtype=jnp.float32)

    ref_f32 = jax.nn.sigmoid(v @ W + hidden_bias)

    # Default path: bf16 operand streams, f32 accumulation / epilogue / output.
    h_prob = rbm_forward(v, W, hidden_bias)
    jax.block_until_ready(h_prob)
    assert h_prob.shape == (batch, n_hidden)
    assert jnp.max(jnp.abs(h_prob - ref_f32)) < 2e-2

    # Forced full-f32 operand path (tighter check).
    h_prob_f32 = rbm_forward(v, W, hidden_bias, compute_dtype=jnp.float32)
    jax.block_until_ready(h_prob_f32)
    assert jnp.max(jnp.abs(h_prob_f32 - ref_f32)) < 1e-2

    # --- Larger RBM: exercises K accumulation (grid K > 1) and the N split ---
    n_visible2, n_hidden2, batch2 = 2048, 512, 256
    W2 = 0.1 * jax.random.normal(k_w2, (n_visible2, n_hidden2), dtype=jnp.float32)
    hidden_bias2 = jnp.zeros((n_hidden2,), dtype=jnp.float32)
    v2 = jax.random.uniform(k_v2, (batch2, n_visible2), dtype=jnp.float32)

    h_prob2 = rbm_forward(v2, W2, hidden_bias2)
    jax.block_until_ready(h_prob2)
    assert h_prob2.shape == (batch2, n_hidden2)
    # Reference with the same bf16 input rounding as the kernel streams.
    ref2_bf16 = jax.nn.sigmoid(
        jnp.dot(v2.astype(jnp.bfloat16).astype(jnp.float32),
                W2.astype(jnp.bfloat16).astype(jnp.float32),
                precision=jax.lax.Precision.HIGHEST) + hidden_bias2)
    assert jnp.max(jnp.abs(h_prob2 - ref2_bf16)) < 1e-2
    # Loose sanity check against the full-f32 reference.
    ref2_f32 = jax.nn.sigmoid(
        jnp.dot(v2, W2, precision=jax.lax.Precision.HIGHEST) + hidden_bias2)
    assert jnp.max(jnp.abs(h_prob2 - ref2_f32)) < 5e-2

    print("KERNEL_OK")
</pallas_src>

<mosaic_0001>
module attributes {stable_mosaic.version = 11 : i64} {
  func.func @_rbm_kernel_acc_in_out(%arg0: i32, %arg1: i32, %arg2: i32, %arg3: memref<8x256xbf16, #tpu.memory_space<vmem>>, %arg4: memref<256x128xbf16, #tpu.memory_space<vmem>>, %arg5: memref<1x128xf32, #tpu.memory_space<vmem>>, %arg6: memref<8x128xf32, #tpu.memory_space<vmem>>) attributes {dimension_semantics = [#tpu.dimension_semantics<parallel>, #tpu.dimension_semantics<parallel>, #tpu.dimension_semantics<arbitrary>], iteration_bounds = array<i64: 1, 1, 1>, scalar_prefetch = 0 : i64, scratch_operands = 0 : i64, tpu.core_type = #tpu.core_type<tc>, window_params = [{transform_indices = @transform_0, window_bounds = array<i64: 8, 256>}, {transform_indices = @transform_1, window_bounds = array<i64: 256, 128>}, {transform_indices = @transform_2, window_bounds = array<i64: 1, 128>}, {transform_indices = @transform_3, window_bounds = array<i64: 8, 128>}]} {
    %c0_i32 = arith.constant 0 : i32
    %0 = arith.cmpi eq, %arg2, %c0_i32 : i32
    %1 = arith.extui %0 : i1 to i32
    %c0_i32_0 = arith.constant 0 : i32
    %2 = arith.cmpi ne, %1, %c0_i32_0 : i32
    scf.if %2 {
      %cst_10 = arith.constant 0.000000e+00 : f32
      %12 = vector.broadcast %cst_10 : f32 to vector<8x128xf32>
      %c0_11 = arith.constant 0 : index
      %c0_12 = arith.constant 0 : index
      %13 = vector.load %arg6[%c0_11, %c0_12] : memref<8x128xf32, #tpu.memory_space<vmem>>, vector<8x128xf32>
      tpu.vector_store %arg6[%c0_11, %c0_12], %12 {strides = array<i32>} : memref<8x128xf32, #tpu.memory_space<vmem>>, vector<8x128xf32>,
    } else {
    }
    %c0 = arith.constant 0 : index
    %c0_1 = arith.constant 0 : index
    %3 = vector.load %arg6[%c0, %c0_1] : memref<8x128xf32, #tpu.memory_space<vmem>>, vector<8x128xf32>
    %c0_2 = arith.constant 0 : index
    %c0_3 = arith.constant 0 : index
    %4 = vector.load %arg3[%c0_2, %c0_3] : memref<8x256xbf16, #tpu.memory_space<vmem>>, vector<8x256xbf16>
    %c0_4 = arith.constant 0 : index
    %c0_5 = arith.constant 0 : index
    %5 = vector.load %arg4[%c0_4, %c0_5] : memref<256x128xbf16, #tpu.memory_space<vmem>>, vector<256x128xbf16>
    %cst = arith.constant dense<0.000000e+00> : vector<8x128xf32>
    %6 = tpu.matmul %4, %5, %cst {dimension_numbers = #tpu.dot_dimension_numbers<[1], [0], [0], [1], [0, 0, 1, 1], [], []>} : vector<8x256xbf16>, vector<256x128xbf16>, vector<8x128xf32> -> vector<8x128xf32>
    %7 = arith.addf %3, %6 : vector<8x128xf32>
    %c0_6 = arith.constant 0 : index
    %c0_7 = arith.constant 0 : index
    %8 = vector.load %arg6[%c0_6, %c0_7] : memref<8x128xf32, #tpu.memory_space<vmem>>, vector<8x128xf32>
    tpu.vector_store %arg6[%c0_6, %c0_7], %7 {strides = array<i32>} : memref<8x128xf32, #tpu.memory_space<vmem>>, vector<8x128xf32>,
    %c0_i32_8 = arith.constant 0 : i32
    %9 = arith.cmpi eq, %arg2, %c0_i32_8 : i32
    %10 = arith.extui %9 : i1 to i32
    %c0_i32_9 = arith.constant 0 : i32
    %11 = arith.cmpi ne, %10, %c0_i32_9 : i32
    scf.if %11 {
      %c0_10 = arith.constant 0 : index
      %c0_11 = arith.constant 0 : index
      %12 = vector.load %arg6[%c0_10, %c0_11] : memref<8x128xf32, #tpu.memory_space<vmem>>, vector<8x128xf32>
      %c0_12 = arith.constant 0 : index
      %c0_13 = arith.constant 0 : index
      %13 = vector.load %arg5[%c0_12, %c0_13] : memref<1x128xf32, #tpu.memory_space<vmem>>, vector<1x128xf32>
      %14 = vector.broadcast %13 : vector<1x128xf32> to vector<8x128xf32>
      %15 = arith.addf %12, %14 : vector<8x128xf32>
      %16 = math.absf %15 : vector<8x128xf32>
      %cst_14 = arith.constant 0.000000e+00 : f32
      %17 = vector.broadcast %cst_14 : f32 to vector<8x128xf32>
      %18 = arith.subf %17, %16 : vector<8x128xf32>
      %19 = math.exp %18 : vector<8x128xf32>
      %cst_15 = arith.constant 1.000000e+00 : f32
      %20 = vector.broadcast %cst_15 : f32 to vector<8x128xf32>
      %21 = arith.addf %20, %19 : vector<8x128xf32>
      %22 = tpu.reciprocal %21 {approx = true} : vector<8x128xf32> -> vector<8x128xf32>
      %cst_16 = arith.constant 0.000000e+00 : f32
      %23 = vector.broadcast %cst_16 : f32 to vector<8x128xf32>
      %24 = arith.cmpf oge, %15, %23 : vector<8x128xf32>
      %25 = arith.mulf %19, %22 : vector<8x128xf32>
      %26 = arith.select %24, %22, %25 : vector<8x128xi1>, vector<8x128xf32>
      %c0_17 = arith.constant 0 : index
      %c0_18 = arith.constant 0 : index
      %27 = vector.load %arg6[%c0_17, %c0_18] : memref<8x128xf32, #tpu.memory_space<vmem>>, vector<8x128xf32>
      tpu.vector_store %arg6[%c0_17, %c0_18], %26 {strides = array<i32>} : memref<8x128xf32, #tpu.memory_space<vmem>>, vector<8x128xf32>,
    } else {
    }
    return
  }
  func.func @transform_0(%arg0: i32, %arg1: i32, %arg2: i32) -> (i32, i32) {
    %c0_i32 = arith.constant 0 : i32
    return %arg0, %arg2 : i32, i32
  }
  func.func @transform_1(%arg0: i32, %arg1: i32, %arg2: i32) -> (i32, i32) {
    %c0_i32 = arith.constant 0 : i32
    return %arg2, %arg1 : i32, i32
  }
  func.func @transform_2(%arg0: i32, %arg1: i32, %arg2: i32) -> (i32, i32) {
    %c0_i32 = arith.constant 0 : i32
    %c0_i32_0 = arith.constant 0 : i32
    return %c0_i32, %arg1 : i32, i32
  }
  func.func @transform_3(%arg0: i32, %arg1: i32, %arg2: i32) -> (i32, i32) {
    %c0_i32 = arith.constant 0 : i32
    return %arg0, %arg1 : i32, i32
  }
}

</mosaic_0001>

<bundles_post_ra>
// kernel: tpu_custom_call.1
= control target key start
LH: loop header
LB: loop body
LE: loop exit
PB: predicated region body
PF: predicated region fallthrough
CT: control target
= control target key end

     0   :  { %8 = vsyncpa [#allocation3], 0  ;;  %s436_s0 = inlined_call_operand.hbm [shape: bf16[8,256], index: 0, kind: input, shape index: {}]   ;;  %s437_s1 = inlined_call_operand.hbm [shape: bf16[256,128], index: 1, kind: input, shape index: {}]   ;;  %s438_s2 = inlined_call_operand.vmem [shape: f32[1,128], index: 2, kind: input, shape index: {}]   ;;  %s439_s3 = inlined_call_operand.hbm [shape: f32[8,128], index: 3, kind: output, shape index: {}]  }
   0x1   :  { %9 = vsyncpa [#allocation6], 0 }
   0x2   :  { %10 = vsyncpa [#allocation4], 0  ;;  %s399_s12 = smov [#allocation2]   ;;  %s400_s14 = smov [#allocation5]  }
   0x3   :  { %s17_s13 = sshll.u32 %s399_s12, 4  ;;  %s26_s15 = sshll.u32 %s400_s14, 4  ;;  %s18_s13 = int_to_ptr.vmem [resolvable:$true] %s17_s13  ;;  %s27_s15 = int_to_ptr.vmem [resolvable:$true] %s26_s15 }
   0x4   :  { %s341_s16 = scalar_lea.vmem %s18_s13, 128  ;;  %p346_p1 = scmp.lt.s32.totalorder %s18_s13, %s18_s13 }
   0x5   :  { %p342_p0 = scmp.ne.s32.totalorder %s18_s13, %s341_s16  ;;  %p347_p2 = scmp.lt.s32.totalorder %s341_s16, %s341_s16 }
   0x7   :  { %p348_p3 = por %p347_p2, %p346_p1 }
   0x9   :  { %p349_p4 = pnand %p348_p3, %p342_p0 }
   0xb   :  { %352 = shalt.err (!%p349_p4)
}
   0xc   :  { %20 = dma.hbm_to_vmem [thread:$0]  %s436_s0, 128, %s18_s13, [#allocation3]  }
   0xd   :  { %s361_s19 = scalar_lea.vmem %s27_s15, 2048  ;;  %p366_p6 = scmp.lt.s32.totalorder %s27_s15, %s27_s15 }
   0xe   :  { %p362_p5 = scmp.ne.s32.totalorder %s27_s15, %s361_s19  ;;  %p367_p7 = scmp.lt.s32.totalorder %s361_s19, %s361_s19 }
  0x10   :  { %p368_p8 = por %p367_p7, %p366_p6 }
  0x12   :  { %p369_p9 = pnand %p368_p8, %p362_p5 }
  0x14   :  { %372 = shalt.err (!%p369_p9)
}
  0x15   :  { %s401_s20 = smov 64   ;;  %s402_s21 = smov 4  }
  0x16   :  { %32 = dma.hbm_to_vmem [thread:$0]  %s437_s1, 2048, %s27_s15, [#allocation6], %s401_s20, %s401_s20, %s402_s21  }
  0x17   :  { %393 = dma.done.wait [#allocation3], 128  }
  0x18   :  { %394 = vsyncadd [#allocation3], 4294967168 }
  0x19   :  { %395 = dma.done.wait [#allocation6], 2048  }
  0x1a   :  { %396 = vsyncadd [#allocation6], 4294965248  ;;  %v311_v0 = vld [vmem:[#allocation5 + $0x78] sm:$0xff]   ;;  %v313_v2 = vld [vmem:[#allocation5 + $0x70] sm:$0xff]   ;;  %s403_s24 = smov [#allocation7]  }
  0x1b   :  { %v312_v1 = vld [vmem:[#allocation5 + $0x38] sm:$0xff]   ;;  %283 = vmatprep.subr.bf16.mxu0 %v311_v0  ;;  %v314_v3 = vld [vmem:[#allocation5 + $0x30] sm:$0xff]   ;;  %v315_v4 = vld [vmem:[#allocation5 + $0x68] sm:$0xff]   ;;  %s254_s25 = sshll.u32 %s403_s24, 4  ;;  %s255_s25 = int_to_ptr.vmem [resolvable:$true] %s254_s25 }
  0x1c   :  { %284 = vmatpush3.bf16.msra.mxu0 %v312_v1  ;;  %v316_v5 = vld [vmem:[#allocation5 + $0x28] sm:$0xff]   ;;  %v317_v6 = vld [vmem:[#allocation5 + $0x60] sm:$0xff]   ;;  %v319_v8 = vld [vmem:[#allocation5 + $0x58] sm:$0xff]   ;;  %s373_s26 = scalar_lea.vmem %s255_s25, 128  ;;  %p378_p11 = scmp.lt.s32.totalorder %s255_s25, %s255_s25 }
  0x1d   :  { %285 = vmatprep.subr.bf16.mxu0 %v313_v2  ;;  %v318_v7 = vld [vmem:[#allocation5 + $0x20] sm:$0xff]   ;;  %v320_v9 = vld [vmem:[#allocation5 + $0x18] sm:$0xff]   ;;  %v321_v10 = vld [vmem:[#allocation5 + $0x50] sm:$0xff]   ;;  %p374_p10 = scmp.ne.s32.totalorder %s255_s25, %s373_s26  ;;  %p379_p12 = scmp.lt.s32.totalorder %s373_s26, %s373_s26 }
  0x1e   :  { %v48_v11 = vld [vmem:[#allocation2] sm:$0xff]  ;;  %v322_v13 = vld [vmem:[#allocation5 + $0x10] sm:$0xff]   ;;  %v323_v14 = vld [vmem:[#allocation5 + $0x48] sm:$0xff]  }
  0x1f   :  { %v265_v12 = vcombine.high %v48_v11, %v48_v11  ;;  %v324_v15 = vld [vmem:[#allocation5 + $0x8] sm:$0xff]   ;;  %v325_v16 = vld [vmem:[#allocation5 + $0x40] sm:$0xff]   ;;  %v264_v18 = vcombine.low %v48_v11, %v48_v11  ;;  %v282_v23 = vld [vmem:[%s438_s2] ss:$0 sm:$0xff]  ;;  %p380_p13 = por %p379_p12, %p378_p11 }
  0x20   :  { %286 = vmatpush3.bf16.msra.mxu0 %v314_v3  ;;  %v326_v17 = vld [vmem:[#allocation5] sm:$0xff]  }
  0x21   :  { %287 = vmatprep.subr.bf16.mxu0 %v315_v4  ;;  %216 = vmatprep.mubr.bf16.mxu0 %v265_v12  ;;  %p381_p0 = pnand %p380_p13, %p374_p10 }
  0x24   :  { %288 = vmatpush3.bf16.msra.mxu0 %v316_v5 }
  0x25   :  { %289 = vmatprep.subr.bf16.mxu0 %v317_v6 }
  0x28   :  { %290 = vmatpush3.bf16.msra.mxu0 %v318_v7 }
  0x29   :  { %291 = vmatprep.subr.bf16.mxu0 %v319_v8 }
  0x2c   :  { %292 = vmatpush3.bf16.msra.mxu0 %v320_v9 }
  0x2d   :  { %293 = vmatprep.subr.bf16.mxu0 %v321_v10 }
  0x30   :  { %294 = vmatpush3.bf16.msra.mxu0 %v322_v13 }
  0x31   :  { %295 = vmatprep.subr.bf16.mxu0 %v323_v14 }
  0x34   :  { %296 = vmatpush3.bf16.msra.mxu0 %v324_v15 }
  0x35   :  { %297 = vmatprep.subr.bf16.mxu0 %v325_v16 }
  0x38   :  { %298 = vmatpush3.bf16.msra.mxu0 %v326_v17 }
  0x3b   :  { %217 = vmatmul.mubr.bf16.vlgmr.msra.gmra.mxu0 %v264_v18 }
  0xfb   :  { %v299_v19 = vpop.f32.mrf.mxu0 }
  0xfd   :  { %v300_v20 = vpop.f32.mrf.mxu0 }
  0xfe   :  { %v301_v21 = vadd.f32 %v300_v20, %v299_v19 }
  0xff   :  { %v302_v22 = vpop.f32.mrf.mxu0 }
 0x100   :  { %v237_v25 = vadd.f32 %v301_v21, %v282_v23 }
 0x101   :  { %v303_v24 = vpop.f32.mrf.mxu0 }
 0x102   :  { %v238_v26 = vand.u32 2147483647, %v237_v25  ;;  %vm244_vm0 = vcmp.ge.f32.partialorder %v237_v25, 0.0 }
 0x104   :  { %v239_v27 = vsub.f32 0.0, %v238_v26 }
 0x106   :  { %v240_v28 = vmul.f32 1.442695, %v239_v27 }
 0x108   :  { %329 = vpow2.f32 %v240_v28 }
 0x115   :  { %v330_v29 = vpop.eup %329 }
 0x116   :  { %v242_v30 = vadd.f32 1.0, %v330_v29 }
 0x118   :  { %331 = vrcp.f32 %v242_v30 }
 0x125   :  { %v332_v31 = vpop.eup %331 }
 0x126   :  { %v245_v32 = vmul.f32 %v332_v31, %v330_v29 }
 0x128   :  { %v246_v33 = vsel %vm244_vm0, %v332_v31, %v245_v32 }
 0x129   :  { %247 = vst [vmem:[#allocation7] sm:$0xff] %v246_v33 }
 0x12a   :  { %384 = shalt.err (!%p381_p0)
}
 0x12b   :  { %257 = dma.vmem_to_hbm [thread:$0]  %s255_s25, 128, %s439_s3, [#allocation4]  }
 0x12c   :  { %397 = dma.done.wait [#allocation4], 128  }
 0x12d   :  { %398 = vsyncadd [#allocation4], 4294967168 }
 0x12e   :  { %261 = vsyncpa [#allocation3], 1 }
 0x12f   :  { %262 = vsyncpa [#allocation6], 1 }
 0x130   :  { %263 = vsyncpa [#allocation4], 1 }

</bundles_post_ra>
